<compile_context>
chip_gen: v6e
topology: v6e:2x2x1
jax: 0.10.0
libtpu: 0.0.40
codegen_flags: <defaults>
</compile_context>

<pallas_src>
import jax
import jax.numpy as jnp
from jax import lax
from jax.experimental import pallas as pl
from jax.experimental.pallas import tpu as pltpu

_MiB = 1024 * 1024


def _round_up(x, m):
    return (x + m - 1) // m * m


def _make_kernel(eps, slab_dtype):
    eps2 = float(eps) * float(eps)  # Python float literal -> not a captured traced constant

    def kernel(u_chunk_ref, txt_ref, w1_ref, b1_ref, w2_ref, out_ref,
               acc_ref, ssq_ref):
        k = pl.program_id(2)
        nk = pl.num_programs(2)

        @pl.when(k == 0)
        def _init():
            acc_ref[...] = jnp.zeros_like(acc_ref)
            ssq_ref[...] = jnp.zeros_like(ssq_ref)

        uc = u_chunk_ref[...]                       # (tb, rpt) raw u rows for this K tile
        v = txt_ref[...]                            # (tb, D)   raw text embeddings
        tb, rpt = uc.shape
        d = v.shape[1]

        # Running ||u||^2 (f32) so the normalization scale is available at finalize.
        ssq_ref[...] += jnp.sum(uc * uc, axis=1, keepdims=True)

        # Cross-product slab for this K tile only, produced directly in the MXU input
        # dtype: slab[b, r*D + j] = u[b, i0 + r] * v[b, j].
        ucs = uc.astype(slab_dtype)
        vs = v.astype(slab_dtype)
        slab = (ucs[:, :, None] * vs[:, None, :]).reshape(tb, rpt * d)

        # First Linear, K-tiled: W1 kept in native (H, K) layout -> contract its axis 1.
        acc_ref[...] += lax.dot_general(
            slab.astype(w1_ref.dtype), w1_ref[...],
            dimension_numbers=(((1,), (1,)), ((), ())),
            preferred_element_type=jnp.float32)

        @pl.when(k == nk - 1)
        def _finalize():
            # 1 / max(||x||, eps)  ==  rsqrt(max(||x||^2, eps^2))
            u_inv = lax.rsqrt(jnp.maximum(ssq_ref[...], eps2))                         # (tb, 1)
            v_inv = lax.rsqrt(jnp.maximum(jnp.sum(v * v, axis=1, keepdims=True), eps2))
            h = jnp.maximum(acc_ref[...] * (u_inv * v_inv) + b1_ref[...], 0.0)         # ReLU
            # Second Linear has out_features=1 -> VPU weighted row-sum, not MXU.
            out_ref[...] = jnp.sum(h * w2_ref[...], axis=1,
                                   keepdims=True).astype(out_ref.dtype)

    return kernel


def _physical_vmem_bytes():
    try:
        info = pltpu.get_tpu_info()
        return int(getattr(info, "vmem_capacity_bytes", 64 * _MiB))
    except Exception:
        return 64 * _MiB                      # conservative fallback (v7x per-core VMEM)


def _vmem_need_bytes(tb, th, D, block_k, w_bytes, slab_bytes):
    """Estimate of total VMEM for one grid step (incl. double buffers & temporaries)."""
    rpt = block_k // D
    need = 2 * th * block_k * w_bytes        # W1 tile, double-buffered
    need += 2 * tb * rpt * 4                 # u chunk, double-buffered
    need += 2 * tb * D * 4                   # txt block, double-buffered
    need += 2 * 2 * th * 4                   # b1 + w2 blocks
    need += 2 * tb * 4                       # output block
    need += tb * th * 4 + tb * 4             # acc + ||u||^2 scratch
    need += 3 * tb * block_k * slab_bytes    # slab temporaries (bcast product + relayout copy)
    need += tb * th * 4                      # dot result before accumulate
    return need


def _legal_block_ks(D):
    K = D * D
    return sorted({r * D for r in range(1, D + 1)
                   if D % r == 0 and ((r * D) % 128 == 0 or r * D == K)})


def make_clip_cross_product_classifier(
        w1, b1, w2, b2, *,
        weight_dtype=jnp.bfloat16,   # W1 streamed dtype (use jnp.float32 for exact parity)
        slab_dtype=None,             # in-kernel slab dtype; default = weight_dtype
                                     #   (pass jnp.float32 on v5e: no bf16 VPU there)
        block_k=None,                # K-tile override; must be rpt*D with rpt | D, 128-aligned
        h_shards=None,               # leading "parallel" H-shard axis (v7x megacore W1 split)
        tb_max=1024,                 # batch-tile cap; tb is grown first so nb == 1
        eps=1e-12):
    """One-time weight prep; returns a jitted apply(image_embeds, text_embeds) -> (B, 1)."""
    H, K = w1.shape
    D = int(round(K ** 0.5))
    assert D * D == K and w2.shape == (1, H) and b1.shape == (H,) and b2.shape == (1,)

    if slab_dtype is None:
        slab_dtype = weight_dtype

    # ---- one-time weight prep (cast + H padding); NOT on the per-call path -------------
    Hp = max(128, _round_up(H, 128))
    w1c = jnp.pad(jnp.asarray(w1, weight_dtype), ((0, Hp - H), (0, 0)))   # (Hp, K), streamed dtype
    b1r = jnp.pad(jnp.asarray(b1, jnp.float32), (0, Hp - H)).reshape(1, Hp)
    w2r = jnp.pad(jnp.asarray(w2, jnp.float32), ((0, 0), (0, Hp - H)))    # (1, Hp)
    b2s = jnp.asarray(b2, jnp.float32).reshape(1, 1)

    if h_shards is None:
        h_shards = 2 if (Hp >= 256 and (Hp // 2) % 128 == 0) else 1
    nh = int(h_shards)
    assert Hp % nh == 0 and (Hp // nh) % 128 == 0, "H shard must be a multiple of 128"
    th = Hp // nh

    w_bytes = jnp.dtype(weight_dtype).itemsize
    s_bytes = jnp.dtype(slab_dtype).itemsize
    kernel = _make_kernel(eps, slab_dtype)

    @jax.jit
    def _apply(image_embeds, text_embeds, w1c, b1r, w2r, b2s):
        B, Din = image_embeds.shape
        assert Din == D and text_embeds.shape == (B, D)
        img = jnp.asarray(image_embeds, jnp.float32)
        txt = jnp.asarray(text_embeds, jnp.float32)

        # ---- batch tiling: grow tb first so W1 is streamed exactly once (nb == 1) ------
        if B <= tb_max:
            nb = 1
            tb = _round_up(B, 8)
        else:
            nb = -(-B // tb_max)
            tb = _round_up(-(-B // nb), 8)
        Bp = tb * nb
        if Bp != B:
            img = jnp.pad(img, ((0, Bp - B), (0, 0)))
            txt = jnp.pad(txt, ((0, Bp - B), (0, 0)))

        # ---- K tiling sized against an explicit (scoped) VMEM budget -------------------
        phys = _physical_vmem_bytes()
        budget = int(0.7 * phys)
        legal = _legal_block_ks(D)
        if block_k is not None:
            if block_k not in legal:
                raise ValueError(f"block_k={block_k} not legal; options: {legal}")
            bk = block_k
        else:
            fitting = [c for c in legal
                       if _vmem_need_bytes(tb, th, D, c, w_bytes, s_bytes) <= budget]
            bk = max(fitting) if fitting else min(legal)
        rpt = bk // D
        nk = K // bk

        need = _vmem_need_bytes(tb, th, D, bk, w_bytes, s_bytes)
        vmem_limit = int(min(phys, max(32 * _MiB, int(need * 1.5))))

        # Pre-chunk image embeddings so each K tile's u rows arrive via BlockSpec DMA
        # (tiny (B, D) relayout in the wrapper; no dynamic lane slicing in-kernel).
        img_chunks = img.reshape(Bp, nk, rpt).transpose(1, 0, 2)          # (nk, Bp, rpt)

        partials = pl.pallas_call(
            kernel,
            out_shape=jax.ShapeDtypeStruct((nh, Bp, 1), jnp.float32),
            grid=(nh, nb, nk),
            in_specs=[
                pl.BlockSpec((None, tb, rpt), lambda h, b, k: (k, b, 0)),   # u rows for K tile k
                pl.BlockSpec((tb, D), lambda h, b, k: (b, 0)),              # text embeddings
                pl.BlockSpec((th, bk), lambda h, b, k: (h, k)),             # W1, streamed along K
                pl.BlockSpec((1, th), lambda h, b, k: (0, h)),              # b1 shard
                pl.BlockSpec((1, th), lambda h, b, k: (0, h)),              # w2 shard
            ],
            out_specs=pl.BlockSpec((None, tb, 1), lambda h, b, k: (h, b, 0)),
            scratch_shapes=[
                pltpu.VMEM((tb, th), jnp.float32),     # first-Linear f32 accumulator
                pltpu.VMEM((tb, 1), jnp.float32),      # running ||u||^2
            ],
            compiler_params=pltpu.CompilerParams(
                dimension_semantics=("parallel", "parallel", "arbitrary"),
                vmem_limit_bytes=vmem_limit),
        )(img_chunks, txt, w1c, b1r, w2r)

        # Cross-H-shard reduction + output bias (tiny; done in the wrapper).
        logits = jnp.sum(partials, axis=0) + b2s
        return logits[:B]

    def apply(image_embeds, text_embeds):
        return _apply(image_embeds, text_embeds, w1c, b1r, w2r, b2s)

    return apply


def _reference(image_embeds, text_embeds, w1, b1, w2, b2):
    """Pure-JAX f32 reference mirroring the PyTorch forward (eval mode)."""
    u = image_embeds / jnp.maximum(
        jnp.linalg.norm(image_embeds, axis=1, keepdims=True), 1e-12)
    v = text_embeds / jnp.maximum(
        jnp.linalg.norm(text_embeds, axis=1, keepdims=True), 1e-12)
    flat = (u[:, :, None] * v[:, None, :]).reshape(u.shape[0], -1)
    h = jnp.maximum(flat @ w1.T + b1, 0.0)
    return h @ w2.T + b2


if __name__ == "__main__":
    # Small shapes consistent with the module: embedding_dim=16, hidden_dim=32, batch=2.
    B, D, H = 2, 16, 32

    key = jax.random.PRNGKey(0)
    k_img, k_txt, k_w1, k_b1, k_w2, k_b2 = jax.random.split(key, 6)

    image_embeds = jax.random.normal(k_img, (B, D), dtype=jnp.float32)
    text_embeds = jax.random.normal(k_txt, (B, D), dtype=jnp.float32)

    # PyTorch Linear default init: U(-1/sqrt(fan_in), 1/sqrt(fan_in)).
    lim1 = 1.0 / (D * D) ** 0.5
    w1 = jax.random.uniform(k_w1, (H, D * D), jnp.float32, -lim1, lim1)
    b1 = jax.random.uniform(k_b1, (H,), jnp.float32, -lim1, lim1)
    lim2 = 1.0 / H ** 0.5
    w2 = jax.random.uniform(k_w2, (1, H), jnp.float32, -lim2, lim2)
    b2 = jax.random.uniform(k_b2, (1,), jnp.float32, -lim2, lim2)

    # block_k=128 forces 2 K tiles so the streamed-weight accumulation path is exercised.
    classifier = make_clip_cross_product_classifier(w1, b1, w2, b2, block_k=128)
    logits = jax.block_until_ready(classifier(image_embeds, text_embeds))

    ref = _reference(image_embeds, text_embeds, w1, b1, w2, b2)
    assert logits.shape == (B, 1)
    assert jnp.allclose(logits, ref, atol=2e-2, rtol=2e-2), (logits, ref)

    print("KERNEL_OK")
</pallas_src>

<mosaic_0001>
module attributes {stable_mosaic.version = 11 : i64} {
  func.func @kernel(%arg0: i32, %arg1: i32, %arg2: i32, %arg3: memref<1x8x8xf32, #tpu.memory_space<vmem>>, %arg4: memref<8x16xf32, #tpu.memory_space<vmem>>, %arg5: memref<128x128xbf16, #tpu.memory_space<vmem>>, %arg6: memref<1x128xf32, #tpu.memory_space<vmem>>, %arg7: memref<1x128xf32, #tpu.memory_space<vmem>>, %arg8: memref<1x8x1xf32, #tpu.memory_space<vmem>>, %arg9: memref<8x128xf32, #tpu.memory_space<vmem>>, %arg10: memref<8x1xf32, #tpu.memory_space<vmem>>) attributes {dimension_semantics = [#tpu.dimension_semantics<parallel>, #tpu.dimension_semantics<parallel>, #tpu.dimension_semantics<arbitrary>], iteration_bounds = array<i64: 1, 1, 2>, scalar_prefetch = 0 : i64, scratch_operands = 2 : i64, tpu.core_type = #tpu.core_type<tc>, window_params = [{transform_indices = @transform_0, window_bounds = array<i64: 1, 8, 8>}, {transform_indices = @transform_1, window_bounds = array<i64: 8, 16>}, {transform_indices = @transform_2, window_bounds = array<i64: 128, 128>}, {transform_indices = @transform_3, window_bounds = array<i64: 1, 128>}, {transform_indices = @transform_4, window_bounds = array<i64: 1, 128>}, {transform_indices = @transform_5, window_bounds = array<i64: 1, 8, 1>}]} {
    %c0_i32 = arith.constant 0 : i32
    %0 = arith.cmpi eq, %arg2, %c0_i32 : i32
    %1 = arith.extui %0 : i1 to i32
    %c0_i32_0 = arith.constant 0 : i32
    %2 = arith.cmpi ne, %1, %c0_i32_0 : i32
    scf.if %2 {
      %cst_17 = arith.constant 0.000000e+00 : f32
      %28 = vector.broadcast %cst_17 : f32 to vector<8x128xf32>
      %c0_18 = arith.constant 0 : index
      %c0_19 = arith.constant 0 : index
      %29 = vector.load %arg9[%c0_18, %c0_19] : memref<8x128xf32, #tpu.memory_space<vmem>>, vector<8x128xf32>
      tpu.vector_store %arg9[%c0_18, %c0_19], %28 {strides = array<i32>} : memref<8x128xf32, #tpu.memory_space<vmem>>, vector<8x128xf32>,
      %cst_20 = arith.constant 0.000000e+00 : f32
      %30 = vector.broadcast %cst_20 : f32 to vector<8x1xf32>
      %c0_21 = arith.constant 0 : index
      %c0_22 = arith.constant 0 : index
      %31 = vector.load %arg10[%c0_21, %c0_22] : memref<8x1xf32, #tpu.memory_space<vmem>>, vector<8x1xf32>
      tpu.vector_store %arg10[%c0_21, %c0_22], %30 {strides = array<i32>} : memref<8x1xf32, #tpu.memory_space<vmem>>, vector<8x1xf32>,
    } else {
    }
    %c0 = arith.constant 0 : index
    %c0_1 = arith.constant 0 : index
    %c0_2 = arith.constant 0 : index
    %3 = vector.load %arg3[%c0, %c0_1, %c0_2] : memref<1x8x8xf32, #tpu.memory_space<vmem>>, vector<1x8x8xf32>
    %4 = vector.shape_cast %3 : vector<1x8x8xf32> to vector<8x8xf32>
    %c0_3 = arith.constant 0 : index
    %c0_4 = arith.constant 0 : index
    %5 = vector.load %arg4[%c0_3, %c0_4] : memref<8x16xf32, #tpu.memory_space<vmem>>, vector<8x16xf32>
    %c0_5 = arith.constant 0 : index
    %c0_6 = arith.constant 0 : index
    %6 = vector.load %arg10[%c0_5, %c0_6] : memref<8x1xf32, #tpu.memory_space<vmem>>, vector<8x1xf32>
    %7 = arith.mulf %4, %4 : vector<8x8xf32>
    %cst = arith.constant dense<0.000000e+00> : vector<8xf32>
    %8 = vector.multi_reduction <add>, %7, %cst [1] : vector<8x8xf32> to vector<8xf32>
    %9 = vector.shape_cast %8 : vector<8xf32> to vector<8x1xf32>
    %10 = arith.addf %6, %9 : vector<8x1xf32>
    %c0_7 = arith.constant 0 : index
    %c0_8 = arith.constant 0 : index
    %11 = vector.load %arg10[%c0_7, %c0_8] : memref<8x1xf32, #tpu.memory_space<vmem>>, vector<8x1xf32>
    tpu.vector_store %arg10[%c0_7, %c0_8], %10 {strides = array<i32>} : memref<8x1xf32, #tpu.memory_space<vmem>>, vector<8x1xf32>,
    %12 = arith.truncf %4 : vector<8x8xf32> to vector<8x8xbf16>
    %13 = arith.truncf %5 : vector<8x16xf32> to vector<8x16xbf16>
    %14 = vector.shape_cast %12 : vector<8x8xbf16> to vector<8x8x1xbf16>
    %15 = vector.shape_cast %13 : vector<8x16xbf16> to vector<8x1x16xbf16>
    %16 = vector.broadcast %14 : vector<8x8x1xbf16> to vector<8x8x16xbf16>
    %17 = vector.broadcast %15 : vector<8x1x16xbf16> to vector<8x8x16xbf16>
    %18 = arith.mulf %16, %17 : vector<8x8x16xbf16>
    %19 = vector.shape_cast %18 : vector<8x8x16xbf16> to vector<8x128xbf16>
    %c0_9 = arith.constant 0 : index
    %c0_10 = arith.constant 0 : index
    %20 = vector.load %arg9[%c0_9, %c0_10] : memref<8x128xf32, #tpu.memory_space<vmem>>, vector<8x128xf32>
    %c0_11 = arith.constant 0 : index
    %c0_12 = arith.constant 0 : index
    %21 = vector.load %arg5[%c0_11, %c0_12] : memref<128x128xbf16, #tpu.memory_space<vmem>>, vector<128x128xbf16>
    %cst_13 = arith.constant dense<0.000000e+00> : vector<8x128xf32>
    %22 = tpu.matmul %19, %21, %cst_13 {dimension_numbers = #tpu.dot_dimension_numbers<[1], [1], [0], [0], [0, 0, 1, 0], [], []>} : vector<8x128xbf16>, vector<128x128xbf16>, vector<8x128xf32> -> vector<8x128xf32>
    %23 = arith.addf %20, %22 : vector<8x128xf32>
    %c0_14 = arith.constant 0 : index
    %c0_15 = arith.constant 0 : index
    %24 = vector.load %arg9[%c0_14, %c0_15] : memref<8x128xf32, #tpu.memory_space<vmem>>, vector<8x128xf32>
    tpu.vector_store %arg9[%c0_14, %c0_15], %23 {strides = array<i32>} : memref<8x128xf32, #tpu.memory_space<vmem>>, vector<8x128xf32>,
    %c1_i32 = arith.constant 1 : i32
    %25 = arith.cmpi eq, %arg2, %c1_i32 : i32
    %26 = arith.extui %25 : i1 to i32
    %c0_i32_16 = arith.constant 0 : i32
    %27 = arith.cmpi ne, %26, %c0_i32_16 : i32
    scf.if %27 {
      %c0_17 = arith.constant 0 : index
      %c0_18 = arith.constant 0 : index
      %28 = vector.load %arg10[%c0_17, %c0_18] : memref<8x1xf32, #tpu.memory_space<vmem>>, vector<8x1xf32>
      %cst_19 = arith.constant 1.000000e-24 : f32
      %29 = vector.broadcast %cst_19 : f32 to vector<8x1xf32>
      %30 = arith.maximumf %28, %29 : vector<8x1xf32>
      %31 = math.rsqrt %30 : vector<8x1xf32>
      %32 = arith.mulf %5, %5 : vector<8x16xf32>
      %cst_20 = arith.constant dense<0.000000e+00> : vector<8xf32>
      %33 = vector.multi_reduction <add>, %32, %cst_20 [1] : vector<8x16xf32> to vector<8xf32>
      %34 = vector.shape_cast %33 : vector<8xf32> to vector<8x1xf32>
      %cst_21 = arith.constant 1.000000e-24 : f32
      %35 = vector.broadcast %cst_21 : f32 to vector<8x1xf32>
      %36 = arith.maximumf %34, %35 : vector<8x1xf32>
      %37 = math.rsqrt %36 : vector<8x1xf32>
      %c0_22 = arith.constant 0 : index
      %c0_23 = arith.constant 0 : index
      %38 = vector.load %arg9[%c0_22, %c0_23] : memref<8x128xf32, #tpu.memory_space<vmem>>, vector<8x128xf32>
      %39 = arith.mulf %31, %37 : vector<8x1xf32>
      %40 = vector.broadcast %39 : vector<8x1xf32> to vector<8x128xf32>
      %41 = arith.mulf %38, %40 : vector<8x128xf32>
      %c0_24 = arith.constant 0 : index
      %c0_25 = arith.constant 0 : index
      %42 = vector.load %arg6[%c0_24, %c0_25] : memref<1x128xf32, #tpu.memory_space<vmem>>, vector<1x128xf32>
      %43 = vector.broadcast %42 : vector<1x128xf32> to vector<8x128xf32>
      %44 = arith.addf %41, %43 : vector<8x128xf32>
      %cst_26 = arith.constant 0.000000e+00 : f32
      %45 = vector.broadcast %cst_26 : f32 to vector<8x128xf32>
      %46 = arith.maximumf %44, %45 : vector<8x128xf32>
      %c0_27 = arith.constant 0 : index
      %c0_28 = arith.constant 0 : index
      %47 = vector.load %arg7[%c0_27, %c0_28] : memref<1x128xf32, #tpu.memory_space<vmem>>, vector<1x128xf32>
      %48 = vector.broadcast %47 : vector<1x128xf32> to vector<8x128xf32>
      %49 = arith.mulf %46, %48 : vector<8x128xf32>
      %cst_29 = arith.constant dense<0.000000e+00> : vector<8xf32>
      %50 = vector.multi_reduction <add>, %49, %cst_29 [1] : vector<8x128xf32> to vector<8xf32>
      %51 = vector.shape_cast %50 : vector<8xf32> to vector<8x1xf32>
      %c0_30 = arith.constant 0 : index
      %c0_31 = arith.constant 0 : index
      %c0_32 = arith.constant 0 : index
      %52 = vector.load %arg8[%c0_30, %c0_31, %c0_32] : memref<1x8x1xf32, #tpu.memory_space<vmem>>, vector<1x8x1xf32>
      %53 = vector.shape_cast %52 : vector<1x8x1xf32> to vector<8x1xf32>
      %54 = vector.shape_cast %51 : vector<8x1xf32> to vector<1x8x1xf32>
      tpu.vector_store %arg8[%c0_30, %c0_31, %c0_32], %54 {strides = array<i32>} : memref<1x8x1xf32, #tpu.memory_space<vmem>>, vector<1x8x1xf32>,
    } else {
    }
    return
  }
  func.func @transform_0(%arg0: i32, %arg1: i32, %arg2: i32) -> (i32, i32, i32) {
    %c0_i32 = arith.constant 0 : i32
    %c0_i32_0 = arith.constant 0 : i32
    return %arg2, %arg1, %c0_i32 : i32, i32, i32
  }
  func.func @transform_1(%arg0: i32, %arg1: i32, %arg2: i32) -> (i32, i32) {
    %c0_i32 = arith.constant 0 : i32
    %c0_i32_0 = arith.constant 0 : i32
    return %arg1, %c0_i32 : i32, i32
  }
  func.func @transform_2(%arg0: i32, %arg1: i32, %arg2: i32) -> (i32, i32) {
    %c0_i32 = arith.constant 0 : i32
    return %arg0, %arg2 : i32, i32
  }
  func.func @transform_3(%arg0: i32, %arg1: i32, %arg2: i32) -> (i32, i32) {
    %c0_i32 = arith.constant 0 : i32
    %c0_i32_0 = arith.constant 0 : i32
    return %c0_i32, %arg0 : i32, i32
  }
  func.func @transform_4(%arg0: i32, %arg1: i32, %arg2: i32) -> (i32, i32) {
    %c0_i32 = arith.constant 0 : i32
    %c0_i32_0 = arith.constant 0 : i32
    return %c0_i32, %arg0 : i32, i32
  }
  func.func @transform_5(%arg0: i32, %arg1: i32, %arg2: i32) -> (i32, i32, i32) {
    %c0_i32 = arith.constant 0 : i32
    %c0_i32_0 = arith.constant 0 : i32
    return %arg0, %arg1, %c0_i32 : i32, i32, i32
  }
}

</mosaic_0001>

<bundles_post_ra>
// kernel: _apply.1
= control target key start
LH: loop header
LB: loop body
LE: loop exit
PB: predicated region body
PF: predicated region fallthrough
CT: control target
= control target key end

     0   :  { %10 = vsyncpa [#allocation5], 0  ;;  %s1437_s0 = inlined_call_operand.vmem [shape: f32[2,8,8], index: 0, kind: input, shape index: {}]   ;;  %s1438_s1 = inlined_call_operand.vmem [shape: f32[8,16], index: 1, kind: input, shape index: {}]   ;;  %s1439_s2 = inlined_call_operand.hbm [shape: bf16[128,256], index: 2, kind: input, shape index: {}]   ;;  %s1440_s3 = inlined_call_operand.vmem [shape: f32[1,128], index: 3, kind: input, shape index: {}]   ;;  %s1441_s4 = inlined_call_operand.vmem [shape: f32[1,128], index: 4, kind: input, shape index: {}]   ;;  %s1442_s5 = inlined_call_operand.vmem [shape: f32[1,8,1], index: 5, kind: output, shape index: {}]  }
   0x1   :  { %12 = vsyncpa [#allocation5 + $0x1], 0  ;;  %s1258_s18 = smov 0   ;;  %s1260_s19 = smov 0  }
   0x2   :  { %s1262_s20 = smov 0   ;;  %s1264_s21 = smov 0  }
   0x3   :  { %s1266_s22 = smov 0   ;;  %s1268_s23 = smov 0  }
   0x4 LB: > { %s984_s24 = sadd.s32 4294967295, %s1207_s23   ;;  %s30_s25 = sadd.s32 1, %s1203_s22  ;;  %s1207_s23 = sphi %s1268_s23, %s18_s23   ;;  %s1203_s22 = sphi %s1266_s22, %s1450_s22   ;;  %s1199_s21 = sphi %s1264_s21, %s1449_s21   ;;  %s1195_s20 = sphi %s1262_s20, %s1448_s20   ;;  %s1191_s19 = sphi %s1260_s19, %s1447_s19   ;;  %s1187_s18 = sphi %s1258_s18, %s1446_s18  }
   0x5   : > { %p31_p0 = scmp.ge.s32.totalorder %s30_s25, 2  ;;  %s100_s26 = sadd.s32 1, %s1195_s20 }
   0x6   : > { %p107_p1 = scmp.ne.s32.totalorder %s1195_s20, %s1191_s19  ;;  %p108_p2 = scmp.eq.s32.totalorder %s1207_s23, 0 }
   0x7   : > { %s1452_s25 = smov (%p31_p0, %s30_s25), 0  ;;  %p113_p4 = scmp.ne.s32.totalorder %s1191_s19, %s1187_s18 }
   0x8   : > { %p1294_p3 = por %p108_p2, %p107_p1  ;;  %s96_s28 = ssub.s32 %s1203_s22, %s1452_s25 }
   0x9   : > { %p114_p5 = scmp.eq.s32.totalorder %s984_s24, 0  ;;  %p98_p6 = scmp.eq.s32.totalorder %s96_s28, 0 }
   0xa   : > { %p1049_p8 = scmp.lt.s32.totalorder %s1207_s23, 2  ;;  %s246_s6 = sand.u32 1, %s1195_s20  }
   0xb   : > { %p1301_p7 = por %p114_p5, %p113_p4  ;;  %s991_s7 = sshll.u32 %s1203_s22, 6 }
   0xc   : > { %s1307_s30 = scalar_select %p98_p6, %s1195_s20, %s100_s26  }
   0xd   : > { %s990_s8 = sshll.u32 %s246_s6, 6  ;;  %s258_s11 = scalar_lea.hbm %s1439_s2, %s991_s7 }
   0xe   : > { %s250_s12 = scalar_lea.vmem [#allocation4], %s990_s8  ;;  %p1316_p9 = pnand %p1049_p8, %p1294_p3 }
   0xf   : > { %s259_s13 = sshll.u32 %s250_s12, 4  ;;  %p992_p10 = scmp.ge.s32.totalorder %s1207_s23, 1  ;;  %s260_s13 = int_to_ptr.vmem [resolvable:$true] %s259_s13 }
  0x10   : > { %s247_s15 = scalar_lea.sflag [#allocation5], %s246_s6  ;;  %p1131_p11 = pneg %p1316_p9 }
  0x11   : > { %s1142_s16 = scalar_lea.vmem %s260_s13, 1024  ;;  %s1209_s17 = smov [#allocation4]  }
  0x12   : > { %p1143_p12 = scmp.ne.s32.totalorder %s260_s13, %s1142_s16  ;;  %s1147_s18 = sshll.u32 %s1209_s17, 4  ;;  %s1148_s18 = int_to_ptr.vmem [resolvable:$false] %s1147_s18 }
  0x13   : > { %s1149_s24 = scalar_lea.vmem %s1148_s18, 2048  ;;  %p1150_p1 = scmp.lt.s32.totalorder %s260_s13, %s1148_s18 }
  0x14   : > { %p1145_p13 = pnand %p1143_p12, %p1131_p11  ;;  %p1151_p2 = scmp.lt.s32.totalorder %s1149_s24, %s1142_s16 }
  0x16   : > { %p1146_p0 = pneg %p1145_p13  ;;  %p1152_p3 = por %p1151_p2, %p1150_p1 }
  0x18   : > { %p1153_p4 = pnand %p1152_p3, %p1146_p0 }
  0x1a   : > { %1156 = shalt.err (!%p1153_p4)
}
  0x1b   : > { %s1210_s26 = smov 128   ;;  %s1211_s27 = smov 64  }
  0x1c   : > { %s1212_s28 = smov 4   ;;  %p267_p5 = scmp.lt.s32.totalorder %s1207_s23, 3 }
  0x1d   : > { %1048 = dma.hbm_to_vmem [thread:$0]  (!%p1316_p9), %s258_s11, 1024, %s260_s13, %s247_s15, %s1210_s26, %s1211_s27, %s1212_s28  }
  0x1e   : > { %p268_p6 = pnand %p992_p10, %p267_p5 }
  0x1f   : > { %s273_s6 = sand.u32 (!%p268_p6), 1, %s1191_s19  }
  0x20   : > { %271 = sbr.rel (%p268_p6) target bundleno = 954 (0x3ba), region = 40  ;;  %s993_s7 = sshll.u32 (!%p268_p6), %s273_s6, 6 }
  0x21   : > { %s274_s8 = scalar_lea.sflag (!%p268_p6), [#allocation5], %s273_s6  ;;  %s1329_s9 = scalar_lea.vmem (!%p268_p6), [#allocation4], %s993_s7 }
  0x25   : > { %1182 = dma.done.wait (%p1301_p7), %s274_s8, 1024  }
  0x26   : > { %1184 = vsyncadd (%p1301_p7), %s274_s8, 4294966272  ;;  %p323_p8 = scmp.lt.s32.totalorder %s1199_s21, 1  ;;  %p995_p9 = scmp.ne.s32.totalorder %s1199_s21, 0 }
  0x28   : > { %s324_s10 = scalar_select %p323_p8, %s1199_s21, 1 }
  0x29   : > { %352 = sbr.rel (%p995_p9) target bundleno = 48 (0x30), region = 48 }
  0x2a   : > { %s994_s11 = sshll.u32 %s324_s10, 3 }
  0x2b   : > { %s329_s14 = scalar_lea.vmem %s1437_s0, %s994_s11 }
  0x2e   : > { %vm354_vm0 = vcmask 7168   ;;  %v1213_v0 = vmov 0.0  }
  0x2f   : > { %353 = vst [vmem:[#allocation2] sm:$0xff] %v1213_v0  ;;  %355 = vst.msk [vmem:[#allocation3] sm:$0xff] %vm354_vm0, %v1213_v0 }
  0x30 PF: > { %v1341_v1 = vld [vmem:[%s329_s14] sm:$0xff]  ;;  %v372_v2 = vlaneseq  ;;  %v1214_v5 = vmov 1966171168   ;;  %s1219_s16 = smov 64   ;;  %s1220_s17 = smov 16   ;;  %vm1221_vm1 = vmmov 0  }
  0x31   : > { %v1346_v3 = vld [vmem:[%s1438_s1] sm:$0xff]  ;;  %v367_v4 = vpack.c.bf16 %v1341_v1, %v1341_v1  ;;  %v433_v6 = vunpack.c.l.s4 %v1214_v5  ;;  %s1222_s18 = smov 32   ;;  %s1223_s24 = smov 80   ;;  %vm360_vm2 = vcmask 64512   ;;  %vm674_vm3 = vcmask 130048  }
  0x32   : > { %v1350_v7 = vshrl.u32 %v372_v2, 7  ;;  %v368_v14 = vpack.c.bf16 %v1346_v3, %v1346_v3  ;;  %s1224_s26 = smov 96   ;;  %s1225_s27 = smov 48   ;;  %vm678_vm4 = vcmask 261120   ;;  %vm681_vm5 = vcmask 392192  }
  0x33   : > { %v370_v8 = vpack.i.b16 %v367_v4, %v367_v4  ;;  %v379_v9 = vshrl.u32 %v367_v4, 16  ;;  %v434_v10 = vunpack.c.0.s8 %v433_v6  ;;  %v1116_v6 = vld [vmem:[%s1329_s9 + $0x38] sm:$0xff]   ;;  %s1226_s28 = smov 112   ;;  %vm684_vm6 = vcmask 523264   ;;  %p1008_p7 = scmp.ne.s32.totalorder %s1199_s21, 1 }
  0x34   : > { %v1353_v11 = vsub.s32 0, %v1350_v7  ;;  %v391_v12 = vsub.s32 1, %v1350_v7  ;;  %v405_v13 = vsub.s32 2, %v1350_v7  ;;  %v419_v22 = vsub.s32 3, %v1350_v7 }
  0x35   : > { %v380_v15 = vpack.i.b16 %v379_v9, %v379_v9  ;;  %v437_v16 = vsub.s32 %v434_v10, %v1350_v7  ;;  %v1117_v9 = vld [vmem:[%s1329_s9 + $0x30] sm:$0xff]   ;;  %v1118_v10 = vld [vmem:[%s1329_s9 + $0x28] sm:$0xff]   ;;  %vm687_vm7 = vcmask 654336   ;;  %vm690_vm8 = vcmask 785408  }
  0x36   : > { %v392_v17 = vrot.slane %v370_v8, %v391_v12  ;;  %v375_v18 = vrot.slane %v370_v8, %v1353_v11  ;;  %v406_v20 = vrot.slane %v370_v8, %v405_v13  ;;  %v420_v31 = vrot.slane %v370_v8, %v419_v22 }
  0x37   : > { %v399_v19 = vrot.slane %v380_v15, %v391_v12  ;;  %v438_v21 = vrot.slane %v368_v14, %v437_v16  ;;  %v413_v25 = vrot.slane %v380_v15, %v405_v13  ;;  %v385_v26 = vrot.slane %v380_v15, %v1353_v11  ;;  %v1119_v12 = vld [vmem:[%s1329_s9 + $0x20] sm:$0xff]   ;;  %v1121_v13 = vld [vmem:[%s1329_s9 + $0x10] sm:$0xff]  }
  0x38   : > { %394 = vbcast.lane.c.b16.xlu1 %v392_v17, 256  ;;  %377 = vbcast.lane.c.b16.xlu0 %v375_v18, 256  ;;  %v427_v36 = vrot.slane %v380_v15, %v419_v22  ;;  %v1215_v8 = vmov 0.0   ;;  %v1216_v14 = vmov 1983009808   ;;  %vm693_vm9 = vcmask 916480  }
  0x39   : > { %v439_v23 = vcombine.high %v438_v21, %v438_v21  ;;  %v446_v24 = vrot.slane %v438_v21, %v437_v16  ;;  %1023 = vmatprep.subr.bf16.mxu0 %v1215_v8  ;;  %v570_v15 = vunpack.c.l.s4 %v1216_v14  ;;  %1039 = vmatprep.mubr.msk.bf16.mxu0 %vm1221_vm1, %v1215_v8  ;;  %vm365_vm10 = vcmask 7168  }
  0x3a   : > { %1024 = vmatpush3.bf16.xpose.msra.mxu0 %v1116_v6 }
  0x3b   : > { %v453_v27 = vrot.slane %v439_v23, %v437_v16  ;;  %v996_v28 = vpack.i.b16 %v446_v24, %v446_v24  ;;  %v454_v29 = vcombine.high %v446_v24, %v446_v24  ;;  %v457_v30 = vunpack.i.h.s16 %v446_v24  ;;  %1025 = vmatprep.subr.bf16.mxu0 %v1215_v8 }
  0x3c   : > { %401 = vbcast.lane.c.b16.xlu1 %v399_v19, 256  ;;  %408 = vbcast.lane.c.b16.xlu0 %v406_v20, 256  ;;  %v571_v18 = vunpack.c.0.s8 %v570_v15 }
  0x3d   : > { %v997_v32 = vpack.i.b16 %v453_v27, %v453_v27  ;;  %v475_v33 = vrot.slane %v996_v28, %v1353_v11  ;;  %v459_v34 = vunpack.i.h.s16 %v453_v27  ;;  %v998_v35 = vpack.i.b16 %v454_v29, %v454_v29 }
  0x3e   : > { %v461_v37 = vunpack.i.h.s16 %v454_v29  ;;  %v465_v38 = vpack.i.b16 %v457_v30, %v457_v30  ;;  %v455_v39 = vcombine.high %v453_v27, %v453_v27  ;;  %v574_v22 = vsub.s32 %v571_v18, %v1350_v7 }
  0x3f   : > { %v483_v40 = vrot.slane %v997_v32, %v1353_v11  ;;  %v505_v41 = vpack.i.b16 %v475_v33, %v475_v33  ;;  %v467_v42 = vpack.i.b16 %v459_v34, %v459_v34  ;;  %v491_v43 = vrot.slane %v998_v35, %v1353_v11  ;;  %v1122_v33 = vld [vmem:[%s1329_s9 + $0x8] sm:$0xff]  }
  0x40   : > { %415 = vbcast.lane.c.b16.xlu1 %v413_v25, 256  ;;  %387 = vbcast.lane.c.b16.xlu0 %v385_v26, 256  ;;  %v469_v44 = vpack.i.b16 %v461_v37, %v461_v37  ;;  %v479_v45 = vrot.slane %v465_v38, %v1353_v11  ;;  %v463_v46 = vunpack.i.h.s16 %v455_v39  ;;  %v999_v50 = vpack.i.b16 %v455_v39, %v455_v39 }
  0x41   : > { %v519_v47 = vpack.i.b16 %v483_v40, %v483_v40  ;;  %v510_v48 = vrot.slane %v505_v41, %v1353_v11  ;;  %v487_v49 = vrot.slane %v467_v42, %v1353_v11  ;;  %v533_v51 = vpack.i.b16 %v491_v43, %v491_v43 }
  0x42   : > { %v495_v52 = vrot.slane %v469_v44, %v1353_v11  ;;  %v512_v53 = vpack.i.b16 %v479_v45, %v479_v45  ;;  %v471_v54 = vpack.i.b16 %v463_v46, %v463_v46  ;;  %v499_v57 = vrot.slane %v999_v50, %v1353_v11  ;;  %1026 = vmatpush3.bf16.xpose.msra.mxu0 %v1117_v9 }
  0x43   : > { %v1371_v55 = vrot.slane %v519_v47, %v1353_v11  ;;  %v526_v56 = vpack.i.b16 %v487_v49, %v487_v49  ;;  %v538_v58 = vrot.slane %v533_v51, %v1353_v11  ;;  %1027 = vmatprep.subr.bf16.mxu0 %v1215_v8  ;;  %v1217_v27 = vmov 1934713408   ;;  %v1123_v51 = vld [vmem:[%s1329_s9] sm:$0xff]  }
  0x44   : > { %429 = vbcast.lane.c.b16.xlu1 %v427_v36, 256  ;;  %422 = vbcast.lane.c.b16.xlu0 %v420_v31, 256  ;;  %v540_v59 = vpack.i.b16 %v495_v52, %v495_v52  ;;  %v517_v60 = vrot.slane %v512_v53, %v1353_v11  ;;  %v503_v61 = vrot.slane %v471_v54, %v1353_v11  ;;  %v587_v28 = vunpack.c.l.s4 %v1217_v27 }
  0x45   : > { %v531_v62 = vrot.slane %v526_v56, %v1353_v11  ;;  %v547_v63 = vpack.i.b16 %v499_v57, %v499_v57 }
  0x46   : > { %v545_v0 = vrot.slane %v540_v59, %v1353_v11  ;;  %v554_v2 = vpack.i.b16 %v503_v61, %v503_v61  ;;  %v588_v35 = vunpack.c.0.s8 %v587_v28  ;;  %v1218_v59 = vmov 0  }
  0x47   : > { %v552_v4 = vrot.slane %v547_v63, %v1353_v11 }
  0x48   : > { %v559_v5 = vrot.slane %v554_v2, %v1353_v11  ;;  %v1120_v11 = vld [vmem:[%s1329_s9 + $0x18] sm:$0xff]   ;;  %v591_v44 = vsub.s32 %v588_v35, %v1350_v7 }
  0x4a   : > { %1028 = vmatpush3.bf16.xpose.msra.mxu0 %v1118_v10 }
  0x4b   : > { %1029 = vmatprep.subr.bf16.mxu0 %v1215_v8 }
  0x52   : > { %1030 = vmatpush3.bf16.xpose.msra.mxu0 %v1119_v12 }
  0x53   : > { %1031 = vmatprep.subr.bf16.mxu0 %v1215_v8 }
  0x5a   : > { %1032 = vmatpush3.bf16.xpose.msra.mxu0 %v1120_v11 }
  0x5b   : > { %1033 = vmatprep.subr.bf16.mxu0 %v1215_v8 }
  0x62   : > { %1034 = vmatpush3.bf16.xpose.msra.mxu0 %v1121_v13 }
  0x63   : > { %1035 = vmatprep.subr.bf16.mxu0 %v1215_v8 }
  0x6a   : > { %1036 = vmatpush3.bf16.xpose.msra.mxu0 %v1122_v33  ;;  %v697_v33 = vld [vmem:[#allocation2] sm:$0xff] }
  0x6b   : > { %1037 = vmatprep.subr.bf16.mxu0 %v1215_v8 }
  0x72   : > { %1038 = vmatpush3.bf16.xpose.msra.mxu0 %v1123_v51 }
  0xaa   : > { %v395_v16 = vpop.permute.xlu1 %394  ;;  %v378_v17 = vpop.permute.xlu0 %377 }
  0xab   : > { %v560_v21 = vmul.bf16 %v510_v48, %v378_v17  ;;  %v562_v34 = vmul.bf16 %v1371_v55, %v395_v16  ;;  %v359_v16 = vmul.f32 %v1341_v1, %v1341_v1 }
  0xad   : > { %v361_v17 = vsel %vm360_vm2, %v359_v16, 0.0 }
  0xae   : > { %v402_v19 = vpop.permute.xlu1 %401  ;;  %v409_v20 = vpop.permute.xlu0 %408 }
  0xaf   : > { %v564_v23 = vmul.bf16 %v538_v58, %v409_v20  ;;  %v563_v38 = vmul.bf16 %v531_v62, %v402_v19 }
  0xb1   : > { %v568_v24 = vcombine.low %v560_v21, %v564_v23 }
  0xb2   : > { %v416_v25 = vpop.permute.xlu1 %415  ;;  %v388_v26 = vpop.permute.xlu0 %387 }
  0xb3   : > { %v575_v29 = vrot.slane %v568_v24, %v574_v22  ;;  %v565_v30 = vmul.bf16 %v545_v0, %v416_v25  ;;  %v561_v31 = vmul.bf16 %v517_v60, %v388_v26 }
  0xb5   : > { %v602_v32 = vcombine.low %v561_v31, %v565_v30  ;;  %v358_v30 = vld [vmem:[#allocation3] sm:$0xff] }
  0xb6   : > { %v430_v36 = vpop.permute.xlu1 %429  ;;  %v423_v37 = vpop.permute.xlu0 %422 }
  0xb7   : > { %v609_v39 = vrot.slane %v602_v32, %v574_v22  ;;  %v567_v40 = vmul.bf16 %v559_v5, %v430_v36  ;;  %v566_v41 = vmul.bf16 %v552_v4, %v423_v37 }
  0xb9   : > { %v610_v42 = vcombine.low %v563_v38, %v567_v40  ;;  %v576_v43 = vcombine.low %v562_v34, %v566_v41 }
  0xbb   : > { %v617_v45 = vrot.slane %v610_v42, %v574_v22  ;;  %v583_v46 = vrot.slane %v576_v43, %v574_v22 }
  0xbd   : > { %v618_v47 = vcombine.low %v609_v39, %v617_v45  ;;  %v619_v48 = vcombine.high %v609_v39, %v617_v45  ;;  %v584_v49 = vcombine.low %v575_v29, %v583_v46  ;;  %v585_v50 = vcombine.high %v575_v29, %v583_v46 }
  0xbf   : > { %v626_v52 = vrot.slane %v618_v47, %v591_v44  ;;  %v592_v53 = vrot.slane %v584_v49, %v591_v44  ;;  %v599_v54 = vrot.slane %v585_v50, %v591_v44  ;;  %v633_v55 = vrot.slane %v619_v48, %v591_v44 }
  0xc1   : > { %v650_v56 = vpack.i.b16 %v633_v55, %v599_v54  ;;  %v639_v57 = vshrl.u32 %v592_v53, 16  ;;  %v640_v58 = vshrl.u32 %v626_v52, 16  ;;  %v600_v60 = vcombine.high %v592_v53, %v1218_v59 }
  0xc2   : > { %v634_v61 = vcombine.high %v626_v52, %v1218_v59  ;;  %v651_v62 = vshrl.u32 %v599_v54, 16  ;;  %v652_v7 = vshrl.u32 %v633_v55, 16  ;;  %v601_v63 = vcombine.high %v599_v54, %v1218_v59 }
  0xc3   : > { %666 = vrot.lane.b32.xlu1 %v650_v56, %s1219_s16  ;;  %v641_v0 = vpack.i.b16 %v640_v58, %v639_v57  ;;  %v635_v2 = vcombine.high %v633_v55, %v1218_v59  ;;  %v645_v4 = vshrl.u32 %v600_v60, 16  ;;  %v638_v5 = vpack.i.b16 %v626_v52, %v592_v53 }
  0xc4   : > { %v644_v6 = vpack.i.b16 %v634_v61, %v600_v60  ;;  %v653_v9 = vpack.i.b16 %v652_v7, %v651_v62  ;;  %v646_v10 = vshrl.u32 %v634_v61, 16  ;;  %v657_v12 = vshrl.u32 %v601_v63, 16 }
  0xc5   : > { %660 = vrot.lane.b32.xlu0 %v641_v0, %s1220_s17  ;;  %v656_v11 = vpack.i.b16 %v635_v2, %v601_v63  ;;  %v658_v13 = vshrl.u32 %v635_v2, 16 }
  0xc6   : > { %v647_v14 = vpack.i.b16 %v646_v10, %v645_v4 }
  0xc7   : > { %662 = vrot.lane.b32.xlu1 %v644_v6, %s1222_s18  ;;  %v659_v15 = vpack.i.b16 %v658_v13, %v657_v12 }
  0xc9   : > { %668 = vrot.lane.b32.xlu0 %v653_v9, %s1223_s24 }
  0xcb   : > { %670 = vrot.lane.b32.xlu1 %v656_v11, %s1224_s26 }
  0xcd   : > { %664 = vrot.lane.b32.xlu0 %v647_v14, %s1225_s27 }
  0xd1   : > { %672 = vrot.lane.b32.xlu0 %v659_v15, %s1226_s28 }
  0xef   : > { %362 = vadd.xlane.f32.xlu1 %v361_v17 }
 0x135   : > { %v667_v18 = vpop.permute.xlu1 %666 }
 0x137   : > { %v661_v19 = vpop.permute.xlu0 %660 }
 0x138   : > { %v677_v20 = vsel %vm674_vm3, %v638_v5, %v661_v19 }
 0x139   : > { %v663_v21 = vpop.permute.xlu1 %662 }
 0x13a   : > { %v680_v22 = vsel %vm678_vm4, %v677_v20, %v663_v21 }
 0x13b   : > { %v669_v8 = vpop.permute.xlu0 %668 }
 0x13d   : > { %v671_v1 = vpop.permute.xlu1 %670 }
 0x13f   : > { %v665_v23 = vpop.permute.xlu0 %664 }
 0x140   : > { %v683_v24 = vsel %vm681_vm5, %v680_v22, %v665_v23 }
 0x141   : > { %v686_v25 = vsel %vm684_vm6, %v683_v24, %v667_v18 }
 0x142   : > { %v689_v26 = vsel %vm687_vm7, %v686_v25, %v669_v8 }
 0x143   : > { %v673_v27 = vpop.permute.xlu0 %672  ;;  %v692_v28 = vsel %vm690_vm8, %v689_v26, %v671_v1 }
 0x144   : > { %v695_v29 = vsel %vm693_vm9, %v692_v28, %v673_v27 }
 0x145   : > { %1040 = vmatmul.mubr.bf16.vlgmr.msra.gmra.mxu0 %v695_v29 }
 0x178   : > { %v363_v31 = vpop.xlane.xlu1 %362 }
 0x179   : > { %v364_v32 = vadd.f32 %v363_v31, %v358_v30 }
 0x17b   : > { %366 = vst.msk [vmem:[#allocation3] sm:$0xff] %vm365_vm10, %v364_v32 }
 0x205   : > { %v796_v34 = vpop.f32.mrf.mxu0 }
 0x206   : > { %v802_v35 = vadd.f32 %v796_v34, %v697_v33 }
 0x207   : > { %v1041_v36 = vpop.f32.mrf.mxu0  ;;  %807 = sbr.rel (%p1008_p7) target bundleno = 954 (0x3ba), region = 52 }
 0x208   : > { %803 = vst [vmem:[#allocation2] sm:$0xff] %v802_v35 }
 0x209   : > { %v799_v37 = vpop.f32.mrf.mxu0 }
 0x20b   : > { %v1042_v38 = vpop.f32.mrf.mxu0 }
 0x20c   : > { %v811_v39 = vmul.f32 %v1346_v3, %v1346_v3  ;;  %v1227_v41 = vmov 0   ;;  %v808_v42 = vld [vmem:[#allocation3] sm:$0xff]  ;;  %v1009_v3 = vld [vmem:[%s1440_s3] ss:$0 sm:$0xff] }
 0x20d   : > { %1124 = vset.pattern.permute.xlu0 %v1227_v41  ;;  %v809_v43 = vmax.f32 %v808_v42, 1e-24  ;;  %v1010_v53 = vld [vmem:[%s1441_s4] ss:$0 sm:$0xff] }
 0x20e   : > { %v812_v40 = vsel %vm674_vm3, %v811_v39, 0.0 }
 0x20f   : > { %813 = vadd.xlane.f32.xlu0 %v812_v40  ;;  %1125 = vrsqrt.f32 %v809_v43  ;;  %v817_v49 = vld [vmem:[#allocation2] sm:$0xff] }
 0x21c   : > { %v1126_v46 = vpop.eup %1125 }
 0x298   : > { %v814_v44 = vpop.xlane.xlu0 %813 }
 0x299   : > { %v815_v45 = vmax.f32 %v814_v44, 1e-24 }
 0x29b   : > { %1127 = vrsqrt.f32 %v815_v45 }
 0x2a8   : > { %v1128_v47 = vpop.eup %1127 }
 0x2a9   : > { %v818_v48 = vmul.f32 %v1128_v47, %v1126_v46 }
 0x2ab   : > { %821 = vperm.xlu0 %1124, %v818_v48  }
 0x326   : > { %v822_v50 = vpop.permute.xlu0 %821 }
 0x327   : > { %v824_v51 = vmul.f32 %v822_v50, %v817_v49 }
 0x329   : > { %v832_v52 = vadd.f32 %v1009_v3, %v824_v51 }
 0x32b   : > { %v833_v54 = vmax.f32 %v832_v52, 0.0 }
 0x32d   : > { %v841_v55 = vmul.f32 %v1010_v53, %v833_v54 }
 0x32f   : > { %842 = vadd.xlane.f32.xlu1 %v841_v55 }
 0x3b8   : > { %v843_v56 = vpop.xlane.xlu1 %842 }
 0x3b9   : > { %844 = vst.msk [vmem:[%s1442_s5] sm:$0xff] %vm365_vm10, %v843_v56 }
 0x3ba PF: > { %s18_s23 = sadd.s32 1, %s1207_s23   ;;  %s1446_s18 = smov %s1191_s19 }
 0x3bb   : > { %p15_p10 = scmp.ge.s32.totalorder %s18_s23, 4   ;;  %s1447_s19 = smov %s1195_s20 }
 0x3bc   : > { %s1448_s20 = smov %s1307_s30  ;;  %s1449_s21 = smov %s1203_s22 }
 0x3bd   : > { %s1450_s22 = smov %s1452_s25  ;;  %17 = sbr.rel (!%p15_p10) target bundleno = 4 (0x4), region = 100 }
 0x3c2   :  { %870 = vsyncpa [#allocation5], 1 }
 0x3c3   :  { %872 = vsyncpa [#allocation5 + $0x1], 1 }

</bundles_post_ra>
